<compile_context>
chip_gen: v7x
topology: tpu7x:2x2x1
jax: 0.10.0
libtpu: 0.0.40
codegen_flags: <defaults>
</compile_context>

<pallas_src>
import jax
import jax.numpy as jnp
from jax.experimental import pallas as pl
from jax.experimental.pallas import tpu as pltpu

HIDDEN = 128            # tcnn 'n_neurons'
DEFAULT_TILE_B = 1024   # batch rows per grid step


def _round_up(n, m):
    return ((n + m - 1) // m) * m


def _ae_kernel(x_ref, mask_ref, w1_ref, w2_ref, w3_ref, w4_ref, out_ref, code_ref):
    x = x_ref[...]                                           # [tile_b, in_features] bf16

    # ---- encoder: Linear + ReLU, Linear + ReLU (f32 accumulation on the MXU) ----
    h1 = jnp.maximum(
        jnp.dot(x, w1_ref[...], preferred_element_type=jnp.float32), 0.0)
    code = jnp.maximum(
        jnp.dot(h1.astype(jnp.bfloat16), w2_ref[...],
                preferred_element_type=jnp.float32), 0.0)
    code_ref[...] = code.astype(code_ref.dtype)

    # ---- dropout: keep/zero select only (1/(1-p) scale is folded into w3) ----
    # mask is bf16 {0,1}; multiplying after the bf16 cast is exact and cheaper.
    dropped = code.astype(jnp.bfloat16) * mask_ref[...]

    # ---- decoder: Linear + ReLU, Linear (no output activation) ----
    h2 = jnp.maximum(
        jnp.dot(dropped, w3_ref[...], preferred_element_type=jnp.float32), 0.0)
    out_ref[...] = jnp.dot(h2.astype(jnp.bfloat16), w4_ref[...],
                           preferred_element_type=jnp.float32).astype(out_ref.dtype)


def autoencoder_forward(x, w1, w2, w3, w4, key, p=0.1, tile_b=DEFAULT_TILE_B):
    """x: [B, in_features] f32.  Returns (out [B, in_features], code [B, bottleneck]) f32."""
    B, in_features = x.shape
    hidden = w1.shape[1]
    bottleneck = w2.shape[1]

    # Dropout keep-mask (training-mode); the 1/(1-p) scale is folded into w3 below.
    keep = jax.random.bernoulli(key, 1.0 - p, (B, bottleneck)).astype(jnp.bfloat16)

    # Pad batch to a multiple of the tile so the grid divides evenly.
    tile_b = min(tile_b, _round_up(B, 8))
    b_pad = _round_up(B, tile_b)
    if b_pad != B:
        x = jnp.pad(x, ((0, b_pad - B), (0, 0)))
        keep = jnp.pad(keep, ((0, b_pad - B), (0, 0)))
    grid = (b_pad // tile_b,)

    # bf16 operands for the MXU; f32 accumulation inside the kernel.
    xb = x.astype(jnp.bfloat16)
    w1b = w1.astype(jnp.bfloat16)
    w2b = w2.astype(jnp.bfloat16)
    w3b = (w3 * (1.0 / (1.0 - p))).astype(jnp.bfloat16)   # dropout scale folded in
    w4b = w4.astype(jnp.bfloat16)

    out, code = pl.pallas_call(
        _ae_kernel,
        out_shape=(
            jax.ShapeDtypeStruct((b_pad, in_features), jnp.float32),
            jax.ShapeDtypeStruct((b_pad, bottleneck), jnp.float32),
        ),
        grid=grid,
        in_specs=[
            pl.BlockSpec((tile_b, in_features), lambda i: (i, 0)),   # x tile
            pl.BlockSpec((tile_b, bottleneck), lambda i: (i, 0)),    # dropout mask tile
            pl.BlockSpec((in_features, hidden), lambda i: (0, 0)),   # w1 (resident)
            pl.BlockSpec((hidden, bottleneck), lambda i: (0, 0)),    # w2 (resident)
            pl.BlockSpec((bottleneck, hidden), lambda i: (0, 0)),    # w3 (resident, pre-scaled)
            pl.BlockSpec((hidden, in_features), lambda i: (0, 0)),   # w4 (resident)
        ],
        out_specs=(
            pl.BlockSpec((tile_b, in_features), lambda i: (i, 0)),
            pl.BlockSpec((tile_b, bottleneck), lambda i: (i, 0)),
        ),
        compiler_params=pltpu.CompilerParams(
            dimension_semantics=("parallel",),
            vmem_limit_bytes=64 * 1024 * 1024,
        ),
    )(xb, keep, w1b, w2b, w3b, w4b)

    return out[:B], code[:B]


def init_params(key, in_features, bottleneck):
    """Deterministic bias-free weight init (uniform, tcnn-style scale)."""
    k1, k2, k3, k4 = jax.random.split(key, 4)

    def u(k, fan_in, fan_out):
        bound = (6.0 / (fan_in + fan_out)) ** 0.5
        return jax.random.uniform(k, (fan_in, fan_out), jnp.float32, -bound, bound)

    w1 = u(k1, in_features, HIDDEN)      # encoder layer 0
    w2 = u(k2, HIDDEN, bottleneck)       # encoder output layer
    w3 = u(k3, bottleneck, HIDDEN)       # decoder layer 0
    w4 = u(k4, HIDDEN, in_features)      # decoder output layer
    return w1, w2, w3, w4


def _reference(x, w1, w2, w3, w4, keep, p):
    """Pure-JAX reference mirroring the kernel's bf16 operand casts."""
    f32 = jnp.float32
    xb = x.astype(jnp.bfloat16).astype(f32)
    w1b = w1.astype(jnp.bfloat16).astype(f32)
    w2b = w2.astype(jnp.bfloat16).astype(f32)
    w3b = (w3 * (1.0 / (1.0 - p))).astype(jnp.bfloat16).astype(f32)
    w4b = w4.astype(jnp.bfloat16).astype(f32)

    h1 = jnp.maximum(xb @ w1b, 0.0)
    code = jnp.maximum(h1.astype(jnp.bfloat16).astype(f32) @ w2b, 0.0)
    dropped = (code.astype(jnp.bfloat16).astype(f32) * keep)
    h2 = jnp.maximum(dropped @ w3b, 0.0)
    out = h2.astype(jnp.bfloat16).astype(f32) @ w4b
    return out, code


if __name__ == "__main__":
    B = 8
    IN_FEATURES = 64
    BOTTLENECK = 32
    P = 0.1

    key = jax.random.PRNGKey(0)
    kx, kw, kd = jax.random.split(key, 3)
    x = jax.random.normal(kx, (B, IN_FEATURES), dtype=jnp.float32)
    w1, w2, w3, w4 = init_params(kw, IN_FEATURES, BOTTLENECK)

    out, code = autoencoder_forward(x, w1, w2, w3, w4, key=kd, p=P)
    jax.block_until_ready((out, code))

    assert out.shape == (B, IN_FEATURES) and code.shape == (B, BOTTLENECK)
    assert bool(jnp.all(code >= 0.0))  # encoder output activation is ReLU

    # Correctness vs. pure-JAX reference using the same dropout mask.
    keep = jax.random.bernoulli(kd, 1.0 - P, (B, BOTTLENECK)).astype(jnp.float32)
    out_ref, code_ref = _reference(x, w1, w2, w3, w4, keep, P)
    assert bool(jnp.allclose(code, code_ref, atol=2e-2, rtol=2e-2))
    assert bool(jnp.allclose(out, out_ref, atol=2e-2, rtol=2e-2))

    print("KERNEL_OK")
</pallas_src>

<mosaic_0001>
module attributes {stable_mosaic.version = 11 : i64} {
  func.func @_ae_kernel(%arg0: i32, %arg1: memref<8x64xbf16, #tpu.memory_space<vmem>>, %arg2: memref<8x32xbf16, #tpu.memory_space<vmem>>, %arg3: memref<64x128xbf16, #tpu.memory_space<vmem>>, %arg4: memref<128x32xbf16, #tpu.memory_space<vmem>>, %arg5: memref<32x128xbf16, #tpu.memory_space<vmem>>, %arg6: memref<128x64xbf16, #tpu.memory_space<vmem>>, %arg7: memref<8x64xf32, #tpu.memory_space<vmem>>, %arg8: memref<8x32xf32, #tpu.memory_space<vmem>>) attributes {dimension_semantics = [#tpu.dimension_semantics<parallel>], iteration_bounds = array<i64: 1>, scalar_prefetch = 0 : i64, scratch_operands = 0 : i64, tpu.core_type = #tpu.core_type<tc>, window_params = [{transform_indices = @transform_0, window_bounds = array<i64: 8, 64>}, {transform_indices = @transform_1, window_bounds = array<i64: 8, 32>}, {pipeline_mode = #tpu.pipeline_mode<synchronous>, transform_indices = @transform_2, window_bounds = array<i64: 64, 128>}, {pipeline_mode = #tpu.pipeline_mode<synchronous>, transform_indices = @transform_3, window_bounds = array<i64: 128, 32>}, {pipeline_mode = #tpu.pipeline_mode<synchronous>, transform_indices = @transform_4, window_bounds = array<i64: 32, 128>}, {pipeline_mode = #tpu.pipeline_mode<synchronous>, transform_indices = @transform_5, window_bounds = array<i64: 128, 64>}, {transform_indices = @transform_6, window_bounds = array<i64: 8, 64>}, {transform_indices = @transform_7, window_bounds = array<i64: 8, 32>}]} {
    %c0 = arith.constant 0 : index
    %c0_0 = arith.constant 0 : index
    %0 = vector.load %arg1[%c0, %c0_0] : memref<8x64xbf16, #tpu.memory_space<vmem>>, vector<8x64xbf16>
    %c0_1 = arith.constant 0 : index
    %c0_2 = arith.constant 0 : index
    %1 = vector.load %arg3[%c0_1, %c0_2] : memref<64x128xbf16, #tpu.memory_space<vmem>>, vector<64x128xbf16>
    %cst = arith.constant dense<0.000000e+00> : vector<8x128xf32>
    %2 = tpu.matmul %0, %1, %cst {dimension_numbers = #tpu.dot_dimension_numbers<[1], [0], [0], [1], [0, 0, 1, 1], [], []>} : vector<8x64xbf16>, vector<64x128xbf16>, vector<8x128xf32> -> vector<8x128xf32>
    %cst_3 = arith.constant 0.000000e+00 : f32
    %3 = vector.broadcast %cst_3 : f32 to vector<8x128xf32>
    %4 = arith.maximumf %2, %3 : vector<8x128xf32>
    %5 = arith.truncf %4 : vector<8x128xf32> to vector<8x128xbf16>
    %c0_4 = arith.constant 0 : index
    %c0_5 = arith.constant 0 : index
    %6 = vector.load %arg4[%c0_4, %c0_5] : memref<128x32xbf16, #tpu.memory_space<vmem>>, vector<128x32xbf16>
    %cst_6 = arith.constant dense<0.000000e+00> : vector<8x32xf32>
    %7 = tpu.matmul %5, %6, %cst_6 {dimension_numbers = #tpu.dot_dimension_numbers<[1], [0], [0], [1], [0, 0, 1, 1], [], []>} : vector<8x128xbf16>, vector<128x32xbf16>, vector<8x32xf32> -> vector<8x32xf32>
    %cst_7 = arith.constant 0.000000e+00 : f32
    %8 = vector.broadcast %cst_7 : f32 to vector<8x32xf32>
    %9 = arith.maximumf %7, %8 : vector<8x32xf32>
    %c0_8 = arith.constant 0 : index
    %c0_9 = arith.constant 0 : index
    %10 = vector.load %arg8[%c0_8, %c0_9] : memref<8x32xf32, #tpu.memory_space<vmem>>, vector<8x32xf32>
    tpu.vector_store %arg8[%c0_8, %c0_9], %9 {strides = array<i32>} : memref<8x32xf32, #tpu.memory_space<vmem>>, vector<8x32xf32>,
    %11 = arith.truncf %9 : vector<8x32xf32> to vector<8x32xbf16>
    %c0_10 = arith.constant 0 : index
    %c0_11 = arith.constant 0 : index
    %12 = vector.load %arg2[%c0_10, %c0_11] : memref<8x32xbf16, #tpu.memory_space<vmem>>, vector<8x32xbf16>
    %13 = arith.mulf %11, %12 : vector<8x32xbf16>
    %c0_12 = arith.constant 0 : index
    %c0_13 = arith.constant 0 : index
    %14 = vector.load %arg5[%c0_12, %c0_13] : memref<32x128xbf16, #tpu.memory_space<vmem>>, vector<32x128xbf16>
    %cst_14 = arith.constant dense<0.000000e+00> : vector<8x128xf32>
    %15 = tpu.matmul %13, %14, %cst_14 {dimension_numbers = #tpu.dot_dimension_numbers<[1], [0], [0], [1], [0, 0, 1, 1], [], []>} : vector<8x32xbf16>, vector<32x128xbf16>, vector<8x128xf32> -> vector<8x128xf32>
    %cst_15 = arith.constant 0.000000e+00 : f32
    %16 = vector.broadcast %cst_15 : f32 to vector<8x128xf32>
    %17 = arith.maximumf %15, %16 : vector<8x128xf32>
    %18 = arith.truncf %17 : vector<8x128xf32> to vector<8x128xbf16>
    %c0_16 = arith.constant 0 : index
    %c0_17 = arith.constant 0 : index
    %19 = vector.load %arg6[%c0_16, %c0_17] : memref<128x64xbf16, #tpu.memory_space<vmem>>, vector<128x64xbf16>
    %cst_18 = arith.constant dense<0.000000e+00> : vector<8x64xf32>
    %20 = tpu.matmul %18, %19, %cst_18 {dimension_numbers = #tpu.dot_dimension_numbers<[1], [0], [0], [1], [0, 0, 1, 1], [], []>} : vector<8x128xbf16>, vector<128x64xbf16>, vector<8x64xf32> -> vector<8x64xf32>
    %c0_19 = arith.constant 0 : index
    %c0_20 = arith.constant 0 : index
    %21 = vector.load %arg7[%c0_19, %c0_20] : memref<8x64xf32, #tpu.memory_space<vmem>>, vector<8x64xf32>
    tpu.vector_store %arg7[%c0_19, %c0_20], %20 {strides = array<i32>} : memref<8x64xf32, #tpu.memory_space<vmem>>, vector<8x64xf32>,
    return
  }
  func.func @transform_0(%arg0: i32) -> (i32, i32) {
    %c0_i32 = arith.constant 0 : i32
    %c0_i32_0 = arith.constant 0 : i32
    return %arg0, %c0_i32 : i32, i32
  }
  func.func @transform_1(%arg0: i32) -> (i32, i32) {
    %c0_i32 = arith.constant 0 : i32
    %c0_i32_0 = arith.constant 0 : i32
    return %arg0, %c0_i32 : i32, i32
  }
  func.func @transform_2(%arg0: i32) -> (i32, i32) {
    %c0_i32 = arith.constant 0 : i32
    %c0_i32_0 = arith.constant 0 : i32
    %c0_i32_1 = arith.constant 0 : i32
    return %c0_i32, %c0_i32_0 : i32, i32
  }
  func.func @transform_3(%arg0: i32) -> (i32, i32) {
    %c0_i32 = arith.constant 0 : i32
    %c0_i32_0 = arith.constant 0 : i32
    %c0_i32_1 = arith.constant 0 : i32
    return %c0_i32, %c0_i32_0 : i32, i32
  }
  func.func @transform_4(%arg0: i32) -> (i32, i32) {
    %c0_i32 = arith.constant 0 : i32
    %c0_i32_0 = arith.constant 0 : i32
    %c0_i32_1 = arith.constant 0 : i32
    return %c0_i32, %c0_i32_0 : i32, i32
  }
  func.func @transform_5(%arg0: i32) -> (i32, i32) {
    %c0_i32 = arith.constant 0 : i32
    %c0_i32_0 = arith.constant 0 : i32
    %c0_i32_1 = arith.constant 0 : i32
    return %c0_i32, %c0_i32_0 : i32, i32
  }
  func.func @transform_6(%arg0: i32) -> (i32, i32) {
    %c0_i32 = arith.constant 0 : i32
    %c0_i32_0 = arith.constant 0 : i32
    return %arg0, %c0_i32 : i32, i32
  }
  func.func @transform_7(%arg0: i32) -> (i32, i32) {
    %c0_i32 = arith.constant 0 : i32
    %c0_i32_0 = arith.constant 0 : i32
    return %arg0, %c0_i32 : i32, i32
  }
}

</mosaic_0001>

<bundles_post_ra>
// kernel: tpu_custom_call.1
= control target key start
LH: loop header
LB: loop body
LE: loop exit
PB: predicated region body
PF: predicated region fallthrough
CT: control target
= control target key end

     0   :  { %13 = vsyncpa [#allocation3], 0  ;;  %s1017_s0 = inlined_call_operand.hbm [shape: bf16[8,64], index: 0, kind: input, shape index: {}]   ;;  %s1018_s1 = inlined_call_operand.hbm [shape: bf16[8,32], index: 1, kind: input, shape index: {}]   ;;  %s1019_s2 = inlined_call_operand.hbm [shape: bf16[64,128], index: 2, kind: input, shape index: {}]   ;;  %s1020_s3 = inlined_call_operand.hbm [shape: bf16[128,32], index: 3, kind: input, shape index: {}]   ;;  %s1021_s4 = inlined_call_operand.hbm [shape: bf16[32,128], index: 4, kind: input, shape index: {}]   ;;  %s1022_s5 = inlined_call_operand.hbm [shape: bf16[128,64], index: 5, kind: input, shape index: {}]   ;;  %s1023_s6 = inlined_call_operand.hbm [shape: f32[8,64], index: 6, kind: output, shape index: {0}]   ;;  %s1024_s7 = inlined_call_operand.hbm [shape: f32[8,32], index: 7, kind: output, shape index: {1}]  }
   0x1   :  { %14 = vsyncpa [#allocation6], 0 }
   0x2   :  { %15 = vsyncpa [#allocation9], 0 }
   0x3   :  { %16 = vsyncpa [#allocation12], 0 }
   0x4   :  { %17 = vsyncpa [#allocation4], 0 }
   0x5   :  { %18 = vsyncpa [#allocation15], 0  ;;  %s825_s24 = smov [#allocation5]   ;;  %s637_s28 = scalar_lea.hbm %s1018_s1, 64 }
   0x6   :  { %s35_s25 = sshll.u32 %s825_s24, 4  ;;  %p638_p0 = scmp.ne.s32.totalorder %s1018_s1, %s637_s28  ;;  %s36_s25 = int_to_ptr.vmem [resolvable:$true] %s35_s25 }
   0x7   :  { %p641_p1 = scmp.lt.u32.totalorder %s637_s28, %s1018_s1 }
   0x9   :  { %p643_p2 = pnand %p641_p1, %p638_p0 }
   0xb   :  { %646 = shalt.err (!%p643_p2)
}
   0xc   :  { %s647_s10 = scalar_lea.vmem %s36_s25, 64  ;;  %p652_p4 = scmp.lt.s32.totalorder %s36_s25, %s36_s25 }
   0xd   :  { %p648_p3 = scmp.ne.s32.totalorder %s36_s25, %s647_s10  ;;  %p653_p5 = scmp.lt.s32.totalorder %s647_s10, %s647_s10 }
   0xf   :  { %p654_p6 = por %p653_p5, %p652_p4 }
  0x11   :  { %p655_p7 = pnand %p654_p6, %p648_p3 }
  0x13   :  { %658 = shalt.err (!%p655_p7)
}
  0x14   :  { %38 = dma.hbm_to_vmem [thread:$0]  %s1018_s1, 64, %s36_s25, [#allocation6]  }
  0x15   :  { %s826_s13 = smov [#allocation8]   ;;  %s827_s15 = smov [#allocation2]  }
  0x16   :  { %s56_s14 = sshll.u32 %s826_s13, 4  ;;  %s25_s16 = sshll.u32 %s827_s15, 4  ;;  %s57_s14 = int_to_ptr.vmem [resolvable:$true] %s56_s14  ;;  %s26_s16 = int_to_ptr.vmem [resolvable:$true] %s25_s16 }
  0x17   :  { %s659_s19 = scalar_lea.hbm %s1020_s3, 1024 }
  0x18   :  { %p660_p8 = scmp.ne.s32.totalorder %s1020_s3, %s659_s19  ;;  %p663_p9 = scmp.lt.u32.totalorder %s659_s19, %s1020_s3 }
  0x1a   :  { %p665_p10 = pnand %p663_p9, %p660_p8 }
  0x1c   :  { %668 = shalt.err (!%p665_p10)
}
  0x1d   :  { %s669_s1 = scalar_lea.vmem %s57_s14, 1024  ;;  %p674_p12 = scmp.lt.s32.totalorder %s57_s14, %s57_s14 }
  0x1e   :  { %p670_p11 = scmp.ne.s32.totalorder %s57_s14, %s669_s1  ;;  %p675_p13 = scmp.lt.s32.totalorder %s669_s1, %s669_s1 }
  0x20   :  { %p676_p0 = por %p675_p13, %p674_p12 }
  0x22   :  { %p677_p1 = pnand %p676_p0, %p670_p11 }
  0x24   :  { %680 = shalt.err (!%p677_p1)
}
  0x25   :  { %s828_s24 = smov 64   ;;  %s829_s25 = smov 4  }
  0x26   :  { %62 = dma.hbm_to_vmem [thread:$0]  %s1020_s3, 1024, %s57_s14, [#allocation9], %s828_s24, %s828_s24, %s829_s25  }
  0x27   :  { %s681_s30 = scalar_lea.hbm %s1017_s0, 64 }
  0x28   :  { %p682_p2 = scmp.ne.s32.totalorder %s1017_s0, %s681_s30  ;;  %p685_p3 = scmp.lt.u32.totalorder %s681_s30, %s1017_s0 }
  0x2a   :  { %p687_p4 = pnand %p685_p3, %p682_p2 }
  0x2c   :  { %690 = shalt.err (!%p687_p4)
}
  0x2d   :  { %s691_s12 = scalar_lea.vmem %s26_s16, 64  ;;  %p696_p6 = scmp.lt.s32.totalorder %s26_s16, %s26_s16 }
  0x2e   :  { %p692_p5 = scmp.ne.s32.totalorder %s26_s16, %s691_s12  ;;  %p697_p7 = scmp.lt.s32.totalorder %s691_s12, %s691_s12 }
  0x30   :  { %p698_p8 = por %p697_p7, %p696_p6 }
  0x32   :  { %p699_p9 = pnand %p698_p8, %p692_p5 }
  0x34   :  { %702 = shalt.err (!%p699_p9)
}
  0x35   :  { %28 = dma.hbm_to_vmem [thread:$0]  %s1017_s0, 64, %s26_s16, [#allocation3]  }
  0x36   :  { %s830_s14 = smov [#allocation7]   ;;  %s831_s17 = smov [#allocation10]  }
  0x37   :  { %s44_s15 = sshll.u32 %s830_s14, 4  ;;  %s68_s18 = sshll.u32 %s831_s17, 4  ;;  %s45_s15 = int_to_ptr.vmem [resolvable:$true] %s44_s15  ;;  %s69_s18 = int_to_ptr.vmem [resolvable:$true] %s68_s18 }
  0x38   :  { %s703_s21 = scalar_lea.hbm %s1019_s2, 512 }
  0x39   :  { %p704_p10 = scmp.ne.s32.totalorder %s1019_s2, %s703_s21  ;;  %p707_p11 = scmp.lt.u32.totalorder %s703_s21, %s1019_s2 }
  0x3b   :  { %p709_p12 = pnand %p707_p11, %p704_p10 }
  0x3d   :  { %712 = shalt.err (!%p709_p12)
}
  0x3e   :  { %s713_s0 = scalar_lea.vmem %s45_s15, 512  ;;  %p718_p0 = scmp.lt.s32.totalorder %s45_s15, %s45_s15 }
  0x3f   :  { %p714_p13 = scmp.ne.s32.totalorder %s45_s15, %s713_s0  ;;  %p719_p1 = scmp.lt.s32.totalorder %s713_s0, %s713_s0 }
  0x41   :  { %p720_p2 = por %p719_p1, %p718_p0 }
  0x43   :  { %p721_p3 = pnand %p720_p2, %p714_p13 }
  0x45   :  { %724 = shalt.err (!%p721_p3)
}
  0x46   :  { %50 = dma.hbm_to_vmem [thread:$0]  %s1019_s2, 512, %s45_s15, [#allocation6], %s828_s24, %s828_s24, %s829_s25  }
  0x47   :  { %s725_s30 = scalar_lea.hbm %s1021_s4, 256 }
  0x48   :  { %p726_p4 = scmp.ne.s32.totalorder %s1021_s4, %s725_s30  ;;  %p729_p5 = scmp.lt.u32.totalorder %s725_s30, %s1021_s4 }
  0x4a   :  { %p731_p6 = pnand %p729_p5, %p726_p4 }
  0x4c   :  { %734 = shalt.err (!%p731_p6)
}
  0x4d   :  { %s735_s12 = scalar_lea.vmem %s69_s18, 256  ;;  %p740_p8 = scmp.lt.s32.totalorder %s69_s18, %s69_s18 }
  0x4e   :  { %p736_p7 = scmp.ne.s32.totalorder %s69_s18, %s735_s12  ;;  %p741_p9 = scmp.lt.s32.totalorder %s735_s12, %s735_s12 }
  0x50   :  { %p742_p10 = por %p741_p9, %p740_p8 }
  0x52   :  { %p743_p11 = pnand %p742_p10, %p736_p7 }
  0x54   :  { %746 = shalt.err (!%p743_p11)
}
  0x55   :  { %74 = dma.hbm_to_vmem [thread:$0]  %s1021_s4, 256, %s69_s18, [#allocation9], %s828_s24, %s828_s24, %s829_s25  }
  0x56   :  { %s832_s13 = smov [#allocation11]   ;;  %s747_s19 = scalar_lea.hbm %s1022_s5, 1024 }
  0x57   :  { %s80_s14 = sshll.u32 %s832_s13, 4  ;;  %p748_p12 = scmp.ne.s32.totalorder %s1022_s5, %s747_s19  ;;  %s81_s14 = int_to_ptr.vmem [resolvable:$true] %s80_s14 }
  0x58   :  { %p751_p13 = scmp.lt.u32.totalorder %s747_s19, %s1022_s5 }
  0x5a   :  { %p753_p0 = pnand %p751_p13, %p748_p12 }
  0x5c   :  { %756 = shalt.err (!%p753_p0)
}
  0x5d   :  { %s757_s1 = scalar_lea.vmem %s81_s14, 1024  ;;  %p762_p2 = scmp.lt.s32.totalorder %s81_s14, %s81_s14 }
  0x5e   :  { %p758_p1 = scmp.ne.s32.totalorder %s81_s14, %s757_s1  ;;  %p763_p3 = scmp.lt.s32.totalorder %s757_s1, %s757_s1 }
  0x60   :  { %p764_p4 = por %p763_p3, %p762_p2 }
  0x62   :  { %p765_p5 = pnand %p764_p4, %p758_p1 }
  0x64   :  { %768 = shalt.err (!%p765_p5)
}
  0x65   :  { %86 = dma.hbm_to_vmem [thread:$0]  %s1022_s5, 1024, %s81_s14, [#allocation12], %s828_s24, %s828_s24, %s829_s25  }
  0x66   :  { %813 = dma.done.wait [#allocation3], 64  }
  0x67   :  { %814 = vsyncadd [#allocation3], 4294967232 }
  0x68   :  { %815 = dma.done.wait [#allocation6], 576  }
  0x69   :  { %816 = vsyncadd [#allocation6], 4294966720 }
  0x6a   :  { %817 = dma.done.wait [#allocation9], 1280  }
  0x6b   :  { %818 = vsyncadd [#allocation9], 4294966016 }
  0x6c   :  { %819 = dma.done.wait [#allocation12], 1024  }
  0x6d   :  { %820 = vsyncadd [#allocation12], 4294966272  ;;  %v833_v0 = vmov 0.0   ;;  %vm834_vm0 = vmmov 0   ;;  %v615_v1 = vld [vmem:[#allocation7] sm:$0xff]   ;;  %v616_v2 = vld [vmem:[#allocation7 + $0x8] sm:$0xff]  }
  0x6e   :  { %543 = vmatprep.subr.bf16.mxu1 %v833_v0  ;;  %551 = vmatprep.mubr.msk.bf16.mxu1 %vm834_vm0, %v833_v0  ;;  %v617_v3 = vld [vmem:[#allocation7 + $0x10] sm:$0xff]   ;;  %v618_v4 = vld [vmem:[#allocation7 + $0x18] sm:$0xff]   ;;  %vm139_vm1 = vcmask 523264   ;;  %v619_v6 = vld [vmem:[#allocation8] sm:$0xff]   ;;  %vm290_vm2 = vcmask 261120   ;;  %s835_s5 = smov [#allocation14]  }
  0x6f   :  { %575 = vmatprep.subr.bf16.mxu0 %v833_v0  ;;  %579 = vmatprep.mubr.msk.bf16.mxu0 %vm834_vm0, %v833_v0  ;;  %v106_v5 = vld [vmem:[#allocation2] sm:$0xf]  ;;  %v620_v7 = vld [vmem:[#allocation8 + $0x8] sm:$0xff]   ;;  %v621_v8 = vld [vmem:[#allocation8 + $0x10] sm:$0xff]   ;;  %s477_s24 = sshll.u32 %s835_s5, 4  ;;  %s478_s24 = int_to_ptr.vmem [resolvable:$true] %s477_s24 }
  0x70   :  { %544 = vmatpush3.bf16.msra.mxu1 %v615_v1  ;;  %v622_v9 = vld [vmem:[#allocation8 + $0x18] sm:$0xff]   ;;  %v623_v10 = vld [vmem:[#allocation8 + $0x20] sm:$0xff]   ;;  %v624_v11 = vld [vmem:[#allocation8 + $0x28] sm:$0xff]   ;;  %s769_s25 = scalar_lea.vmem %s478_s24, 128  ;;  %p774_p7 = scmp.lt.s32.totalorder %s478_s24, %s478_s24 }
  0x71   :  { %545 = vmatprep.subr.bf16.mxu1 %v833_v0  ;;  %v625_v12 = vld [vmem:[#allocation8 + $0x30] sm:$0xff]   ;;  %v626_v13 = vld [vmem:[#allocation8 + $0x38] sm:$0xff]   ;;  %v627_v20 = vld [vmem:[#allocation10] sm:$0xff]   ;;  %p770_p6 = scmp.ne.s32.totalorder %s478_s24, %s769_s25  ;;  %p775_p8 = scmp.lt.s32.totalorder %s769_s25, %s769_s25 }
  0x72   :  { %576 = vmatpush3.bf16.msra.mxu0 %v627_v20  ;;  %v628_v21 = vld [vmem:[#allocation10 + $0x8] sm:$0xff]   ;;  %v293_v25 = vld [vmem:[#allocation5] sm:$0xf]  ;;  %v629_v29 = vld [vmem:[#allocation11] sm:$0xff]  }
  0x73   :  { %577 = vmatprep.subr.bf16.mxu0 %v833_v0  ;;  %v630_v31 = vld [vmem:[#allocation11 + $0x8] sm:$0xff]   ;;  %v631_v32 = vld [vmem:[#allocation11 + $0x10] sm:$0xff]   ;;  %v632_v33 = vld [vmem:[#allocation11 + $0x18] sm:$0xff]   ;;  %p776_p9 = por %p775_p8, %p774_p7 }
  0x74   :  { %546 = vmatpush3.bf16.msra.mxu1 %v616_v2  ;;  %v633_v34 = vld [vmem:[#allocation11 + $0x20] sm:$0xff]   ;;  %v634_v35 = vld [vmem:[#allocation11 + $0x28] sm:$0xff]   ;;  %v635_v36 = vld [vmem:[#allocation11 + $0x30] sm:$0xff]  }
  0x75   :  { %547 = vmatprep.subr.bf16.mxu1 %v833_v0  ;;  %v636_v37 = vld [vmem:[#allocation11 + $0x38] sm:$0xff]   ;;  %p777_p10 = pnand %p776_p9, %p770_p6 }
  0x76   :  { %578 = vmatpush3.bf16.msra.mxu0 %v628_v21 }
  0x77   :  { %583 = vmatprep.subr.bf16.mxu0 %v833_v0 }
  0x78   :  { %548 = vmatpush3.bf16.msra.mxu1 %v617_v3 }
  0x79   :  { %549 = vmatprep.subr.bf16.mxu1 %v833_v0 }
  0x7c   :  { %550 = vmatpush3.bf16.msra.mxu1 %v618_v4 }
  0x7d   :  { %555 = vmatprep.subr.bf16.mxu1 %v833_v0 }
  0x7f   :  { %552 = vmatmul.mubr.msk.bf16.vlgmr.msra.gmra.mrb[0].mxu1 %vm139_vm1, %v106_v5 }
  0x80   :  { %556 = vmatpush3.bf16.msra.mxu1 %v619_v6  ;;  %571 = vmatprep.mubr.msk.bf16.mxu1 %vm834_vm0, %v833_v0 }
  0x81   :  { %557 = vmatprep.subr.bf16.mxu1 %v833_v0 }
  0x84   :  { %558 = vmatpush3.bf16.msra.mxu1 %v620_v7 }
  0x85   :  { %559 = vmatprep.subr.bf16.mxu1 %v833_v0 }
  0x88   :  { %560 = vmatpush3.bf16.msra.mxu1 %v621_v8 }
  0x89   :  { %561 = vmatprep.subr.bf16.mxu1 %v833_v0 }
  0x8c   :  { %562 = vmatpush3.bf16.msra.mxu1 %v622_v9 }
  0x8d   :  { %563 = vmatprep.subr.bf16.mxu1 %v833_v0 }
  0x90   :  { %564 = vmatpush3.bf16.msra.mxu1 %v623_v10 }
  0x91   :  { %565 = vmatprep.subr.bf16.mxu1 %v833_v0 }
  0x94   :  { %566 = vmatpush3.bf16.msra.mxu1 %v624_v11 }
  0x95   :  { %567 = vmatprep.subr.bf16.mxu1 %v833_v0 }
  0x98   :  { %568 = vmatpush3.bf16.msra.mxu1 %v625_v12 }
  0x99   :  { %569 = vmatprep.subr.bf16.mxu1 %v833_v0 }
  0x9c   :  { %570 = vmatpush3.bf16.msra.mxu1 %v626_v13 }
 0x152   :  { %v177_v14 = vpop.f32.mrb[0].mxu1 }
 0x153   :  { %v183_v15 = vmax.f32 %v177_v14, 0.0  ;;  %v553_v16 = vpop.f32.mrb[1].mxu1 }
 0x154   :  { %v180_v17 = vpop.f32.mrb[2].mxu1 }
 0x155   :  { %v184_v18 = vpack.c.bf16 %v183_v15, %v183_v15  ;;  %v554_v19 = vpop.f32.mrb[3].mxu1 }
 0x157   :  { %572 = vmatmul.mubr.bf16.vlgmr.msra.gmra.mrb[4].mxu1 %v184_v18 }
 0x22a   :  { %v283_v22 = vpop.f32.mrb[4].mxu1 }
 0x22b   :  { %v289_v23 = vmax.f32 %v283_v22, 0.0  ;;  %v573_v24 = vpop.f32.mrb[5].mxu1 }
 0x22c   :  { %v286_v26 = vpop.f32.mrb[6].mxu1 }
 0x22d   :  { %v292_v27 = vpack.c.bf16 %v289_v23, %v289_v23  ;;  %v574_v28 = vpop.f32.mrb[7].mxu1  ;;  %291 = vst.msk [vmem:[#allocation14] sm:$0xff] %vm290_vm2, %v289_v23 }
 0x22f   :  { %v294_v30 = vmul.bf16 %v293_v25, %v292_v27 }
 0x231   :  { %580 = vmatmul.mubr.msk.bf16.vlgmr.msra.gmra.mrb[0].mxu0 %vm290_vm2, %v294_v30 }
 0x232   :  { %584 = vmatpush3.bf16.msra.mxu0 %v629_v29  ;;  %599 = vmatprep.mubr.msk.bf16.mxu0 %vm834_vm0, %v833_v0 }
 0x233   :  { %585 = vmatprep.subr.bf16.mxu0 %v833_v0 }
 0x236   :  { %586 = vmatpush3.bf16.msra.mxu0 %v630_v31 }
 0x237   :  { %587 = vmatprep.subr.bf16.mxu0 %v833_v0 }
 0x23a   :  { %588 = vmatpush3.bf16.msra.mxu0 %v631_v32 }
 0x23b   :  { %589 = vmatprep.subr.bf16.mxu0 %v833_v0 }
 0x23e   :  { %590 = vmatpush3.bf16.msra.mxu0 %v632_v33 }
 0x23f   :  { %591 = vmatprep.subr.bf16.mxu0 %v833_v0 }
 0x242   :  { %592 = vmatpush3.bf16.msra.mxu0 %v633_v34 }
 0x243   :  { %593 = vmatprep.subr.bf16.mxu0 %v833_v0 }
 0x246   :  { %594 = vmatpush3.bf16.msra.mxu0 %v634_v35 }
 0x247   :  { %595 = vmatprep.subr.bf16.mxu0 %v833_v0 }
 0x24a   :  { %596 = vmatpush3.bf16.msra.mxu0 %v635_v36 }
 0x24b   :  { %597 = vmatprep.subr.bf16.mxu0 %v833_v0 }
 0x24e   :  { %598 = vmatpush3.bf16.msra.mxu0 %v636_v37 }
 0x304   :  { %v348_v38 = vpop.f32.mrb[0].mxu0 }
 0x305   :  { %v354_v39 = vmax.f32 %v348_v38, 0.0  ;;  %v581_v40 = vpop.f32.mrb[1].mxu0 }
 0x306   :  { %v351_v41 = vpop.f32.mrb[2].mxu0 }
 0x307   :  { %v355_v42 = vpack.c.bf16 %v354_v39, %v354_v39  ;;  %v582_v43 = vpop.f32.mrb[3].mxu0 }
 0x309   :  { %600 = vmatmul.mubr.bf16.vlgmr.msra.gmra.mrb[4].mxu0 %v355_v42 }
 0x30a   :  { %780 = shalt.err (!%p777_p10)
}
 0x30b   :  { %s781_s16 = scalar_lea.hbm %s1024_s7, 128 }
 0x30c   :  { %p782_p11 = scmp.ne.s32.totalorder %s1024_s7, %s781_s16  ;;  %p785_p12 = scmp.lt.u32.totalorder %s781_s16, %s1024_s7 }
 0x30e   :  { %p787_p13 = pnand %p785_p12, %p782_p11 }
 0x310   :  { %790 = shalt.err (!%p787_p13)
}
 0x311   :  { %480 = dma.vmem_to_hbm [thread:$0]  %s478_s24, 128, %s1024_s7, [#allocation15]  }
 0x312   :  { %s836_s10 = smov [#allocation13]  }
 0x313   :  { %s467_s11 = sshll.u32 %s836_s10, 4  ;;  %s468_s11 = int_to_ptr.vmem [resolvable:$true] %s467_s11 }
 0x314   :  { %s791_s12 = scalar_lea.vmem %s468_s11, 128  ;;  %p796_p1 = scmp.lt.s32.totalorder %s468_s11, %s468_s11 }
 0x315   :  { %p792_p0 = scmp.ne.s32.totalorder %s468_s11, %s791_s12  ;;  %p797_p2 = scmp.lt.s32.totalorder %s791_s12, %s791_s12 }
 0x317   :  { %p798_p3 = por %p797_p2, %p796_p1 }
 0x319   :  { %p799_p4 = pnand %p798_p3, %p792_p0 }
 0x3dc   :  { %v454_v44 = vpop.f32.mrb[4].mxu0 }
 0x3dd   :  { %460 = vst.msk [vmem:[#allocation13] sm:$0xff] %vm139_vm1, %v454_v44  ;;  %v601_v45 = vpop.f32.mrb[5].mxu0 }
 0x3de   :  { %v457_v46 = vpop.f32.mrb[6].mxu0 }
 0x3df   :  { %802 = shalt.err (!%p799_p4)
}
 0x3e0   :  { %s803_s13 = scalar_lea.hbm %s1023_s6, 128 }
 0x3e1   :  { %p804_p5 = scmp.ne.s32.totalorder %s1023_s6, %s803_s13  ;;  %p807_p6 = scmp.lt.u32.totalorder %s803_s13, %s1023_s6 }
 0x3e3   :  { %p809_p7 = pnand %p807_p6, %p804_p5 }
 0x3e5   :  { %812 = shalt.err (!%p809_p7)
}
 0x3e6   :  { %470 = dma.vmem_to_hbm [thread:$0]  %s468_s11, 128, %s1023_s6, [#allocation4]   ;;  %v602_v47 = vpop.f32.mrb[7].mxu0 }
 0x3e7   :  { %821 = dma.done.wait [#allocation4], 128  }
 0x3e8   :  { %822 = vsyncadd [#allocation4], 4294967168 }
 0x3e9   :  { %823 = dma.done.wait [#allocation15], 128  }
 0x3ea   :  { %824 = vsyncadd [#allocation15], 4294967168 }
 0x3eb   :  { %487 = vsyncpa [#allocation3], 1 }
 0x3ec   :  { %488 = vsyncpa [#allocation6], 1 }
 0x3ed   :  { %489 = vsyncpa [#allocation9], 1 }
 0x3ee   :  { %490 = vsyncpa [#allocation12], 1 }
 0x3ef   :  { %491 = vsyncpa [#allocation4], 1 }
 0x3f0   :  { %492 = vsyncpa [#allocation15], 1 }

</bundles_post_ra>
